<compile_context>
chip_gen: v7x
topology: tpu7x:2x2x1
jax: 0.10.0
libtpu: 0.0.40
codegen_flags: <defaults>
</compile_context>

<pallas_src>
import functools
import math

import jax
import jax.numpy as jnp
from jax.experimental import pallas as pl
from jax.experimental.pallas import tpu as pltpu

_LANE = 128


def _ceil_to(x, m):
    return ((x + m - 1) // m) * m


def _pad2(x, rows, cols):
    return jnp.pad(x, ((0, rows - x.shape[0]), (0, cols - x.shape[1])))


def _choose_row_tile(n):
    # Single row tile for small problems; 512-row panels at scale (>=512 keeps
    # the A-stream near HBM roofline per measured tiling data).
    if n <= 512:
        return _ceil_to(n, 8)
    return 512


def _vmem_capacity_bytes():
    try:
        info = pltpu.get_tpu_info()
        cap = getattr(info, "vmem_capacity_bytes", None)
        if cap:
            return int(cap)
    except Exception:
        pass
    return 64 * 1024 * 1024  # conservative fallback (v7x per-TC VMEM)


# ----------------------------------------------------------------------------
# One HyperMSG layer on a row panel of the folded operator:
#   out[rows, :] = act( (Aw[rows, :] @ X) @ W + b )
# aw_ref : (tm, N)      bf16   row panel of (A * iw^T)
# x_ref  : (N, in_p)    bf16   full previous-layer activation
# w_ref  : (in_p, out_p) bf16  padded weight
# b_ref  : (1, out_p)   f32    padded bias
# out_ref: (tm, out_p)  bf16/f32
# ----------------------------------------------------------------------------
def _layer_kernel(aw_ref, x_ref, w_ref, b_ref, out_ref, *, activation):
    # N x N aggregation panel: bf16 operands, f32 accumulation on the MXU.
    agg = jnp.dot(aw_ref[...], x_ref[...], preferred_element_type=jnp.float32)
    # Small feature matmul, also bf16 on the MXU; epilogue stays f32.
    y = jnp.dot(agg.astype(jnp.bfloat16), w_ref[...],
                preferred_element_type=jnp.float32) + b_ref[...]
    if activation == "relu":
        y = jnp.maximum(y, 0.0)
    elif activation == "sigmoid":
        y = jax.nn.sigmoid(y)
    out_ref[...] = y.astype(out_ref.dtype)


def _hypermsg_layer(aw_p, x, w, b, *, activation, out_dtype, tm, vmem_cap):
    np_rows, n = aw_p.shape
    in_p = x.shape[1]
    out_p = w.shape[1]
    grid = (np_rows // tm,)

    out_bytes = jnp.dtype(out_dtype).itemsize
    needed = (2 * tm * n * 2              # Aw panels (double-buffered, bf16)
              + 2 * n * in_p * 2          # full X (bf16)
              + 2 * in_p * out_p * 2      # W (bf16)
              + 2 * out_p * 4             # bias (f32)
              + 2 * tm * out_p * out_bytes  # output panels
              + tm * in_p * 4 + tm * out_p * 4)  # f32 intermediates
    cap = max(vmem_cap - 4 * 1024 * 1024, 16 * 1024 * 1024)
    vmem_limit = int(min(max(needed * 5 // 4, 16 * 1024 * 1024), cap))

    kernel = functools.partial(_layer_kernel, activation=activation)

    return pl.pallas_call(
        kernel,
        out_shape=jax.ShapeDtypeStruct((np_rows, out_p), out_dtype),
        grid=grid,
        in_specs=[
            pl.BlockSpec((tm, n), lambda i: (i, 0)),       # Aw row panel
            pl.BlockSpec((n, in_p), lambda i: (0, 0)),     # full X
            pl.BlockSpec((in_p, out_p), lambda i: (0, 0)),  # W
            pl.BlockSpec((1, out_p), lambda i: (0, 0)),     # bias
        ],
        out_specs=pl.BlockSpec((tm, out_p), lambda i: (i, 0)),
        compiler_params=pltpu.CompilerParams(
            dimension_semantics=("parallel",),
            vmem_limit_bytes=vmem_limit),
    )(aw_p, x, w, b)


def hypermsg_multimedia_forward(A, H, input_weight, params):
    N, d = H.shape
    h1_dim = params["W1"].shape[1]
    h2_dim = params["W2"].shape[1]
    c = params["W3"].shape[1]

    h1p = _ceil_to(h1_dim, _LANE)
    h2p = _ceil_to(h2_dim, _LANE)
    cp = _ceil_to(c, _LANE)

    # Fold per-node importance weights into the operator ONCE (column scale)
    # and cast the NxN operator to bf16 in the wrapper (amortizes to zero if
    # the hypergraph is static across calls).
    Aw = (A.astype(jnp.float32) * input_weight.reshape(1, N).astype(jnp.float32)
          ).astype(jnp.bfloat16)

    tm = _choose_row_tile(N)
    np_rows = _ceil_to(N, tm)
    Aw_p = jnp.pad(Aw, ((0, np_rows - N), (0, 0)))

    # Padded bf16 weights (exact: padded rows/cols are zero), f32 biases.
    W1 = _pad2(params["W1"], d, h1p).astype(jnp.bfloat16)
    b1 = _pad2(params["b1"], 1, h1p).astype(jnp.float32)
    W2 = _pad2(params["W2"], h1p, h2p).astype(jnp.bfloat16)
    b2 = _pad2(params["b2"], 1, h2p).astype(jnp.float32)
    W3 = _pad2(params["W3"], h2p, cp).astype(jnp.bfloat16)
    b3 = _pad2(params["b3"], 1, cp).astype(jnp.float32)

    vmem_cap = _vmem_capacity_bytes()

    h1 = _hypermsg_layer(Aw_p, H.astype(jnp.bfloat16), W1, b1,
                         activation="relu", out_dtype=jnp.bfloat16,
                         tm=tm, vmem_cap=vmem_cap)[:N]
    # TODO(synk): training-mode dropout (RNG mask) intentionally omitted;
    # F.dropout(..., training=False) is the identity at inference time.
    h2 = _hypermsg_layer(Aw_p, h1, W2, b2,
                         activation="relu", out_dtype=jnp.bfloat16,
                         tm=tm, vmem_cap=vmem_cap)[:N]
    out = _hypermsg_layer(Aw_p, h2, W3, b3,
                          activation="sigmoid", out_dtype=jnp.float32,
                          tm=tm, vmem_cap=vmem_cap)
    # Padded output lanes hold sigmoid(0)=0.5 and padded rows are junk; both
    # are sliced off here.
    return out[:N, :c]


# ----------------------------------------------------------------------------
# Glue: deterministic parameter init (PyTorch-style uniform(-1/sqrt(b), 1/sqrt(b)))
# and hypergraph operator construction from an incidence matrix.
# ----------------------------------------------------------------------------
def init_params(key, d, c):
    def one_layer(k, a, b):
        k1, k2 = jax.random.split(k)
        stdv = 1.0 / math.sqrt(b)
        W = jax.random.uniform(k1, (a, b), jnp.float32, -stdv, stdv)
        bias = jax.random.uniform(k2, (1, b), jnp.float32, -stdv, stdv)
        return W, bias

    k1, k2, k3 = jax.random.split(key, 3)
    W1, b1 = one_layer(k1, d, 32)
    W2, b2 = one_layer(k2, 32, 16)
    W3, b3 = one_layer(k3, 16, c)
    return {"W1": W1, "b1": b1, "W2": W2, "b2": b2, "W3": W3, "b3": b3}


def build_hypergraph_operator(key, n_nodes, n_edges):
    """Incidence matrix G [N, M] -> normalized A = Dv^-1/2 G De^-1 G^T Dv^-1/2."""
    G = (jax.random.uniform(key, (n_nodes, n_edges)) < 0.4).astype(jnp.float32)
    # guarantee every node/edge has at least one incidence (self-membership)
    G = G.at[jnp.arange(n_nodes), jnp.arange(n_nodes) % n_edges].set(1.0)
    dv = jnp.sum(G, axis=1)                      # node degrees   [N]
    de = jnp.sum(G, axis=0)                      # edge degrees   [M]
    dv_inv_sqrt = 1.0 / jnp.sqrt(dv)
    de_inv = 1.0 / de
    A = (dv_inv_sqrt[:, None] * G) @ (de_inv[:, None] * G.T) * dv_inv_sqrt[None, :]
    return A.astype(jnp.float32), dv


def reference_forward_bf16(A, H, iw, p):
    """Pure-JAX reference mirroring the kernel's bf16 matmul order exactly."""
    Aw = (A * iw.reshape(1, -1)).astype(jnp.bfloat16)

    def layer(x, W, b):
        agg = jnp.dot(Aw, x.astype(jnp.bfloat16),
                      preferred_element_type=jnp.float32)
        return jnp.dot(agg.astype(jnp.bfloat16), W.astype(jnp.bfloat16),
                       preferred_element_type=jnp.float32) + b

    h1 = jnp.maximum(layer(H, p["W1"], p["b1"]), 0.0)
    h2 = jnp.maximum(layer(h1, p["W2"], p["b2"]), 0.0)
    return jax.nn.sigmoid(layer(h2, p["W3"], p["b3"]))


def reference_forward_f32(A, H, iw, p):
    """Plain f32 reference of the original module math."""
    def layer(x, W, b):
        return A @ ((x * iw) @ W) + b
    h1 = jnp.maximum(layer(H, p["W1"], p["b1"]), 0.0)
    h2 = jnp.maximum(layer(h1, p["W2"], p["b2"]), 0.0)
    return jax.nn.sigmoid(layer(h2, p["W3"], p["b3"]))


if __name__ == "__main__":
    key = jax.random.PRNGKey(0)
    k_graph, k_feat, k_param = jax.random.split(key, 3)

    N, M = 16, 6          # nodes, hyperedges
    d, c = 8, 4           # input feature dim, number of classes

    A, dv = build_hypergraph_operator(k_graph, N, M)
    H = jax.random.normal(k_feat, (N, d), jnp.float32)
    # node-importance weights (degree-normalized), shape [N, 1]
    input_weight = (dv / jnp.max(dv)).reshape(N, 1).astype(jnp.float32)

    params = init_params(k_param, d, c)

    out = hypermsg_multimedia_forward(A, H, input_weight, params)
    out = jax.block_until_ready(out)
    assert out.shape == (N, c)

    ref_bf16 = reference_forward_bf16(A, H, input_weight, params)
    ref_f32 = reference_forward_f32(A, H, input_weight, params)
    assert jnp.allclose(out, ref_bf16, atol=1e-2, rtol=1e-2)
    assert jnp.allclose(out, ref_f32, atol=5e-2, rtol=5e-2)

    print("KERNEL_OK")
</pallas_src>

<mosaic_0001>
module attributes {stable_mosaic.version = 11 : i64} {
  func.func @_layer_kernel(%arg0: i32, %arg1: memref<16x16xbf16, #tpu.memory_space<vmem>>, %arg2: memref<16x8xbf16, #tpu.memory_space<vmem>>, %arg3: memref<8x128xbf16, #tpu.memory_space<vmem>>, %arg4: memref<1x128xf32, #tpu.memory_space<vmem>>, %arg5: memref<16x128xbf16, #tpu.memory_space<vmem>>) attributes {dimension_semantics = [#tpu.dimension_semantics<parallel>], iteration_bounds = array<i64: 1>, scalar_prefetch = 0 : i64, scratch_operands = 0 : i64, tpu.core_type = #tpu.core_type<tc>, window_params = [{transform_indices = @transform_0, window_bounds = array<i64: 16, 16>}, {pipeline_mode = #tpu.pipeline_mode<synchronous>, transform_indices = @transform_1, window_bounds = array<i64: 16, 8>}, {pipeline_mode = #tpu.pipeline_mode<synchronous>, transform_indices = @transform_2, window_bounds = array<i64: 8, 128>}, {pipeline_mode = #tpu.pipeline_mode<synchronous>, transform_indices = @transform_3, window_bounds = array<i64: 1, 128>}, {transform_indices = @transform_4, window_bounds = array<i64: 16, 128>}]} {
    %c0 = arith.constant 0 : index
    %c0_0 = arith.constant 0 : index
    %0 = vector.load %arg1[%c0, %c0_0] : memref<16x16xbf16, #tpu.memory_space<vmem>>, vector<16x16xbf16>
    %c0_1 = arith.constant 0 : index
    %c0_2 = arith.constant 0 : index
    %1 = vector.load %arg2[%c0_1, %c0_2] : memref<16x8xbf16, #tpu.memory_space<vmem>>, vector<16x8xbf16>
    %cst = arith.constant dense<0.000000e+00> : vector<16x8xf32>
    %2 = tpu.matmul %0, %1, %cst {dimension_numbers = #tpu.dot_dimension_numbers<[1], [0], [0], [1], [0, 0, 1, 1], [], []>} : vector<16x16xbf16>, vector<16x8xbf16>, vector<16x8xf32> -> vector<16x8xf32>
    %3 = arith.truncf %2 : vector<16x8xf32> to vector<16x8xbf16>
    %c0_3 = arith.constant 0 : index
    %c0_4 = arith.constant 0 : index
    %4 = vector.load %arg3[%c0_3, %c0_4] : memref<8x128xbf16, #tpu.memory_space<vmem>>, vector<8x128xbf16>
    %cst_5 = arith.constant dense<0.000000e+00> : vector<16x128xf32>
    %5 = tpu.matmul %3, %4, %cst_5 {dimension_numbers = #tpu.dot_dimension_numbers<[1], [0], [0], [1], [0, 0, 1, 1], [], []>} : vector<16x8xbf16>, vector<8x128xbf16>, vector<16x128xf32> -> vector<16x128xf32>
    %c0_6 = arith.constant 0 : index
    %c0_7 = arith.constant 0 : index
    %6 = vector.load %arg4[%c0_6, %c0_7] : memref<1x128xf32, #tpu.memory_space<vmem>>, vector<1x128xf32>
    %7 = vector.broadcast %6 : vector<1x128xf32> to vector<16x128xf32>
    %8 = arith.addf %5, %7 : vector<16x128xf32>
    %cst_8 = arith.constant 0.000000e+00 : f32
    %9 = vector.broadcast %cst_8 : f32 to vector<16x128xf32>
    %10 = arith.maximumf %8, %9 : vector<16x128xf32>
    %11 = arith.truncf %10 : vector<16x128xf32> to vector<16x128xbf16>
    %c0_9 = arith.constant 0 : index
    %c0_10 = arith.constant 0 : index
    %12 = vector.load %arg5[%c0_9, %c0_10] : memref<16x128xbf16, #tpu.memory_space<vmem>>, vector<16x128xbf16>
    tpu.vector_store %arg5[%c0_9, %c0_10], %11 {strides = array<i32>} : memref<16x128xbf16, #tpu.memory_space<vmem>>, vector<16x128xbf16>,
    return
  }
  func.func @transform_0(%arg0: i32) -> (i32, i32) {
    %c0_i32 = arith.constant 0 : i32
    %c0_i32_0 = arith.constant 0 : i32
    return %arg0, %c0_i32 : i32, i32
  }
  func.func @transform_1(%arg0: i32) -> (i32, i32) {
    %c0_i32 = arith.constant 0 : i32
    %c0_i32_0 = arith.constant 0 : i32
    %c0_i32_1 = arith.constant 0 : i32
    return %c0_i32, %c0_i32_0 : i32, i32
  }
  func.func @transform_2(%arg0: i32) -> (i32, i32) {
    %c0_i32 = arith.constant 0 : i32
    %c0_i32_0 = arith.constant 0 : i32
    %c0_i32_1 = arith.constant 0 : i32
    return %c0_i32, %c0_i32_0 : i32, i32
  }
  func.func @transform_3(%arg0: i32) -> (i32, i32) {
    %c0_i32 = arith.constant 0 : i32
    %c0_i32_0 = arith.constant 0 : i32
    %c0_i32_1 = arith.constant 0 : i32
    return %c0_i32, %c0_i32_0 : i32, i32
  }
  func.func @transform_4(%arg0: i32) -> (i32, i32) {
    %c0_i32 = arith.constant 0 : i32
    %c0_i32_0 = arith.constant 0 : i32
    return %arg0, %c0_i32 : i32, i32
  }
}

</mosaic_0001>

<bundles_post_ra>
// kernel: tpu_custom_call.1
= control target key start
LH: loop header
LB: loop body
LE: loop exit
PB: predicated region body
PF: predicated region fallthrough
CT: control target
= control target key end

     0   :  { %v226_v1 = vmov 0.0   ;;  %vm227_vm0 = vmmov 0   ;;  %vm34_vm1 = vcmask 130048   ;;  %s280_s0 = inlined_call_operand.vmem [shape: bf16[16,16], index: 0, kind: input, shape index: {}]   ;;  %s281_s1 = inlined_call_operand.vmem [shape: bf16[16,8], index: 1, kind: input, shape index: {}]   ;;  %s282_s2 = inlined_call_operand.vmem [shape: bf16[8,128], index: 2, kind: input, shape index: {}]   ;;  %s283_s3 = inlined_call_operand.vmem [shape: f32[1,128], index: 3, kind: input, shape index: {}]   ;;  %s284_s4 = inlined_call_operand.hbm [shape: bf16[16,128], index: 4, kind: output, shape index: {}]  }
   0x1   :  { %v200_v0 = vld [vmem:[%s281_s1] sm:$0xff]   ;;  %183 = vmatprep.subr.bf16.mxu0 %v226_v1  ;;  %189 = vmatprep.subr.bf16.mxu1 %v226_v1 }
   0x2   :  { %v201_v2 = vld [vmem:[%s280_s0] sm:$0xff]   ;;  %184 = vmatpush3.bf16.msra.mxu0 %v200_v0  ;;  %185 = vmatprep.mubr.msk.bf16.mxu0 %vm227_vm0, %v226_v1 }
   0x3   :  { %9 = vsyncpa [#allocation3], 0  ;;  %191 = vmatprep.mubr.msk.bf16.mxu1 %vm227_vm0, %v226_v1  ;;  %v80_v3 = vld [vmem:[%s282_s2] sm:$0xf]  ;;  %vm92_vm2 = vcmask 1043456   ;;  %vm88_vm3 = vcmask 64512  }
   0x4   :  { %v94_v4 = vsel %vm92_vm2, %v80_v3, 0  ;;  %v168_v10 = vld [vmem:[%s283_s3] ss:$0 sm:$0xff]  ;;  %s228_s2 = smov [#allocation2]  }
   0x5   :  { %186 = vmatmul.mubr.msk.bf16.vlgmr.msra.gmra.mrb[0].mxu0 %vm34_vm1, %v201_v2  ;;  %190 = vmatpush3.bf16.msra.mxu1 %v94_v4  ;;  %s154_s21 = sshll.u32 %s228_s2, 4  ;;  %s155_s21 = int_to_ptr.vmem [resolvable:$true] %s154_s21 }
   0x6   :  { %s202_s22 = scalar_lea.vmem %s155_s21, 128  ;;  %p207_p1 = scmp.lt.s32.totalorder %s155_s21, %s155_s21 }
   0x7   :  { %p203_p0 = scmp.ne.s32.totalorder %s155_s21, %s202_s22  ;;  %p208_p2 = scmp.lt.s32.totalorder %s202_s22, %s202_s22 }
   0x9   :  { %p209_p3 = por %p208_p2, %p207_p1 }
   0xb   :  { %p210_p4 = pnand %p209_p3, %p203_p0 }
  0xd8   :  { %v72_v5 = vpop.f32.mrb[0].mxu0 }
  0xd9   :  { %v187_v6 = vpop.f32.mrb[1].mxu0 }
  0xda   :  { %v75_v7 = vpop.f32.mrb[2].mxu0 }
  0xdb   :  { %v79_v8 = vpack.c.bf16 %v75_v7, %v72_v5  ;;  %v188_v9 = vpop.f32.mrb[3].mxu0 }
  0xdd   :  { %192 = vmatmul.mubr.msk.bf16.vlgmr.msra.gmra.mrb[0].mxu1 %vm88_vm3, %v79_v8 }
 0x1b0   :  { %v130_v11 = vpop.f32.mrb[0].mxu1 }
 0x1b1   :  { %v131_v12 = vadd.f32 %v168_v10, %v130_v11  ;;  %v193_v13 = vpop.f32.mrb[1].mxu1 }
 0x1b2   :  { %v133_v14 = vpop.f32.mrb[2].mxu1 }
 0x1b3   :  { %v134_v15 = vadd.f32 %v168_v10, %v133_v14  ;;  %v194_v16 = vpop.f32.mrb[3].mxu1  ;;  %v137_v17 = vmax.f32 %v131_v12, 0.0 }
 0x1b5   :  { %v138_v18 = vmax.f32 %v134_v15, 0.0 }
 0x1b7   :  { %v177_v19 = vpack.c.bf16 %v138_v18, %v137_v17 }
 0x1b9   :  { %178 = vst [vmem:[#allocation2] sm:$0xff] %v177_v19  }
 0x1ba   :  { %213 = shalt.err (!%p210_p4)
}
 0x1bb   :  { %s214_s24 = scalar_lea.hbm %s284_s4, 128 }
 0x1bc   :  { %p215_p5 = scmp.ne.s32.totalorder %s284_s4, %s214_s24  ;;  %p218_p6 = scmp.lt.u32.totalorder %s214_s24, %s284_s4 }
 0x1be   :  { %p220_p7 = pnand %p218_p6, %p215_p5 }
 0x1c0   :  { %223 = shalt.err (!%p220_p7)
}
 0x1c1   :  { %s229_s29 = smov 64   ;;  %s230_s30 = smov 4  }
 0x1c2   :  { %160 = dma.vmem_to_hbm [thread:$0]  %s155_s21, 128, %s284_s4, [#allocation3], %s229_s29, %s229_s29, %s230_s30  }
 0x1c3   :  { %224 = dma.done.wait [#allocation3], 128  }
 0x1c4   :  { %225 = vsyncadd [#allocation3], 4294967168 }
 0x1c5   :  { %164 = vsyncpa [#allocation3], 1 }

</bundles_post_ra>
